<compile_context>
chip_gen: v7x
topology: tpu7x:2x2x1
jax: 0.10.0
libtpu: 0.0.40
codegen_flags: <defaults>
</compile_context>

<pallas_src>
import jax
import jax.numpy as jnp
from jax.experimental import pallas as pl
from jax.experimental.pallas import tpu as pltpu


def _upx2_kernel(x_ref, w_ref, post_ref, o_ref):
    """One (batch, spatial-tile) step of fused ConvTranspose2d(k=2,s=2) + BN + PReLU.

    x_ref:    (1, Cin, THW)     input activations, flat spatial on the lane axis
    w_ref:    (4*Cout, Cin)     fused weight (BN scale folded in), rows = (dh, dw, co)
    post_ref: (4*Cout, 2)       column 0 = fused BN shift, column 1 = PReLU slope (f32)
    o_ref:    (1, 4*Cout, THW)  tap-major output
    """
    # Single MXU matmul covering all 4 deconv taps and all output channels (f32 accumulate).
    y = jnp.dot(w_ref[...], x_ref[0], preferred_element_type=jnp.float32)   # (4*Cout, THW) f32
    y = y + post_ref[:, 0:1]                               # fused BatchNorm shift
    y = jnp.where(y >= 0.0, y, post_ref[:, 1:2] * y)       # fused per-channel PReLU
    o_ref[0] = y.astype(o_ref.dtype)


def _pick_spatial_tile(hw, n_batch, cin, cout, in_itemsize, out_itemsize,
                       *, target_block_bytes=8 << 20, min_grid_steps=8):
    """Largest 128-aligned divisor of `hw` whose double-buffered in+out blocks stay within
    `target_block_bytes` (VMEM-safe on every generation incl. v7x's 64 MiB).  Splits further only
    when the whole grid would otherwise have too few steps to keep the software pipeline (and both
    v7x TensorCores) busy -- pipeline depth comes from the whole grid, not from forced splits."""
    def block_bytes(t):   # double-buffered input + output blocks for one grid step
        return 2 * t * (cin * in_itemsize + 4 * cout * out_itemsize)

    cands = [d for d in range(128, hw, 128) if hw % d == 0] + [hw]
    fits = [t for t in cands if block_bytes(t) <= target_block_bytes] or cands[:1]
    best = fits[-1]                                   # biggest tile within the budget
    if n_batch * (hw // best) < min_grid_steps:       # too few steps -> split for pipeline / 2 TCs
        deeper = [t for t in fits if n_batch * (hw // t) >= min_grid_steps]
        best = max(deeper) if deeper else fits[0]
    return best


def upx2_pallas(x_nchw, deconv_w, bn_gamma, bn_beta, bn_mean, bn_var, prelu_alpha,
                *, eps=1e-3, out_dtype=None, intermediate_dtype=None):
    """Fused UPx2.forward (eval-mode BatchNorm with running statistics).

    out_dtype:          dtype of the returned NCHW tensor (default: x.dtype).
    intermediate_dtype: dtype of the tap-major tensor the kernel writes to HBM
                        (default: bf16 for f32 inputs -- halves the dominant writeback).
    """
    n, cin, h, w = x_nchw.shape
    cin_w, cout, kh, kw = deconv_w.shape      # PyTorch ConvTranspose2d weight: (Cin, Cout, kH, kW)
    assert cin == cin_w and kh == 2 and kw == 2
    hw = h * w

    out_dtype = x_nchw.dtype if out_dtype is None else jnp.dtype(out_dtype)
    if intermediate_dtype is None:
        intermediate_dtype = jnp.bfloat16 if x_nchw.dtype == jnp.float32 else x_nchw.dtype
    inter_dtype = jnp.dtype(intermediate_dtype)

    # ---- Fold BatchNorm into per-channel scale/shift; fold the scale into the weight. ----
    # TODO(synk): training-mode BN (batch statistics) is not implemented; this is eval-mode BN.
    scale = (bn_gamma.astype(jnp.float32) / jnp.sqrt(bn_var.astype(jnp.float32) + eps))   # (Cout,)
    shift = bn_beta.astype(jnp.float32) - bn_mean.astype(jnp.float32) * scale             # (Cout,)

    # Fused weight: rows ordered (dh, dw, co), columns ci.  Kept in the activation dtype so the
    # kernel issues no per-step casts (the extra f32 MXU passes stay hidden under HBM).
    wf = jnp.transpose(deconv_w, (2, 3, 1, 0)).reshape(4 * cout, cin)       # (dh, dw, co) rows
    wf = (wf.astype(jnp.float32) * jnp.tile(scale, 4)[:, None]).astype(x_nchw.dtype)

    # BN shift and PReLU slope merged into one small resident operand: (4*Cout, 2) f32.
    post = jnp.stack(
        [jnp.tile(shift, 4), jnp.tile(prelu_alpha.astype(jnp.float32), 4)], axis=-1)

    # ---- Kernel input: NCHW kept; flattening the spatial dims is a free (contiguous) reshape. ----
    x_flat = x_nchw.reshape(n, cin, hw)

    # Guard for H*W not 128-aligned: small images use one full-extent tile; large ones are padded
    # up to a multiple of 128 (cheap: padding only touches the small input stream) so the grid
    # keeps several VMEM-safe steps instead of one huge block (v7x has only 64 MiB VMEM).
    hw_pad = hw
    if hw % 128 != 0:
        full_bytes = 2 * hw * (cin * x_nchw.dtype.itemsize + 4 * cout * inter_dtype.itemsize)
        if full_bytes > (12 << 20):
            hw_pad = ((hw + 127) // 128) * 128
            x_flat = jnp.pad(x_flat, ((0, 0), (0, 0), (0, hw_pad - hw)))

    thw = _pick_spatial_tile(hw_pad, n, cin, cout,
                             x_nchw.dtype.itemsize, inter_dtype.itemsize)
    n_tiles = hw_pad // thw

    cost = pl.CostEstimate(
        flops=2 * n * cin * 4 * cout * hw_pad,
        transcendentals=0,
        bytes_accessed=(n * cin * hw_pad * x_nchw.dtype.itemsize        # activations in
                        + n * 4 * cout * hw_pad * inter_dtype.itemsize  # tap-major out
                        + 4 * cout * (cin * x_nchw.dtype.itemsize + 8)),  # weight + shift/slope
    )

    out_tapmajor = pl.pallas_call(
        _upx2_kernel,
        out_shape=jax.ShapeDtypeStruct((n, 4 * cout, hw_pad), inter_dtype),
        grid=(n, n_tiles),
        in_specs=[
            pl.BlockSpec((1, cin, thw), lambda b, t: (b, 0, t)),     # activations, lane-dense
            pl.BlockSpec((4 * cout, cin), lambda b, t: (0, 0)),      # fused weight     (resident)
            pl.BlockSpec((4 * cout, 2), lambda b, t: (0, 0)),        # BN shift + slope (resident)
        ],
        out_specs=pl.BlockSpec((1, 4 * cout, thw), lambda b, t: (b, 0, t)),
        compiler_params=pltpu.CompilerParams(
            dimension_semantics=("parallel", "parallel"),
            vmem_limit_bytes=32 * 1024 * 1024),
        cost_estimate=cost,
    )(x_flat, wf, post)

    # ---- Tap-major -> NCHW:  out[n, co, 2h+dh, 2w+dw] = tapmajor[n, (dh, dw, co), (h, w)]. ----
    # One fused XLA transpose (reads the bf16 intermediate, writes out_dtype); see header comment
    # for why this interleave deliberately stays outside the kernel.
    out = out_tapmajor[:, :, :hw].reshape(n, 2, 2, cout, h, w)       # (n, dh, dw, co, h, w)
    out = jnp.transpose(out, (0, 3, 4, 1, 5, 2))                     # (n, co, h, dh, w, dw)
    return out.reshape(n, cout, 2 * h, 2 * w).astype(out_dtype)


if __name__ == "__main__":
    # Small shapes consistent with UPx2(nIn, nOut).
    nIn, nOut = 4, 8
    N, H, W = 2, 16, 16
    eps = 1e-3

    key = jax.random.PRNGKey(0)
    k1, k2, k3, k4, k5, k6, k7 = jax.random.split(key, 7)
    x = jax.random.normal(k1, (N, nIn, H, W), dtype=jnp.float32)                  # NCHW input
    w = jax.random.normal(k2, (nIn, nOut, 2, 2), dtype=jnp.float32) * 0.1         # deconv weight
    gamma = 1.0 + 0.1 * jax.random.normal(k3, (nOut,), dtype=jnp.float32)         # BN weight
    beta = 0.1 * jax.random.normal(k4, (nOut,), dtype=jnp.float32)                # BN bias
    mean = 0.1 * jax.random.normal(k5, (nOut,), dtype=jnp.float32)                # BN running_mean
    var = 0.5 + jnp.abs(jax.random.normal(k6, (nOut,), dtype=jnp.float32)) * 0.5  # BN running_var
    alpha = 0.25 + 0.05 * jax.random.normal(k7, (nOut,), dtype=jnp.float32)       # PReLU slopes

    out = upx2_pallas(x, w, gamma, beta, mean, var, alpha, eps=eps)
    jax.block_until_ready(out)

    # Pure-JAX f32 reference: ConvTranspose2d(k=2, s=2, no bias) -> eval BN -> PReLU.
    t = jnp.einsum('nihw,iopq->nohpwq', x, w)                 # (N, Cout, H, 2, W, 2)
    deconv = t.reshape(N, nOut, 2 * H, 2 * W)                 # out[2h+p, 2w+q]
    sc = gamma / jnp.sqrt(var + eps)
    ref = deconv * sc[None, :, None, None] + (beta - mean * sc)[None, :, None, None]
    ref = jnp.where(ref >= 0.0, ref, alpha[None, :, None, None] * ref)

    assert out.shape == ref.shape == (N, nOut, 2 * H, 2 * W)
    assert out.dtype == ref.dtype
    # f32 MXU accumulate; only the final values round through the bf16 tap-major intermediate.
    assert jnp.allclose(out, ref, atol=2e-2, rtol=2e-2)

    print("KERNEL_OK")
</pallas_src>

<mosaic_0001>
module attributes {stable_mosaic.version = 11 : i64} {
  func.func @_upx2_kernel(%arg0: i32, %arg1: i32, %arg2: memref<1x4x128xf32, #tpu.memory_space<vmem>>, %arg3: memref<32x4xf32, #tpu.memory_space<vmem>>, %arg4: memref<32x2xf32, #tpu.memory_space<vmem>>, %arg5: memref<1x32x128xbf16, #tpu.memory_space<vmem>>) attributes {dimension_semantics = [#tpu.dimension_semantics<parallel>, #tpu.dimension_semantics<parallel>], iteration_bounds = array<i64: 2, 2>, scalar_prefetch = 0 : i64, scratch_operands = 0 : i64, tpu.core_type = #tpu.core_type<tc>, window_params = [{transform_indices = @transform_0, window_bounds = array<i64: 1, 4, 128>}, {pipeline_mode = #tpu.pipeline_mode<synchronous>, transform_indices = @transform_1, window_bounds = array<i64: 32, 4>}, {pipeline_mode = #tpu.pipeline_mode<synchronous>, transform_indices = @transform_2, window_bounds = array<i64: 32, 2>}, {transform_indices = @transform_3, window_bounds = array<i64: 1, 32, 128>}]} {
    %c0 = arith.constant 0 : index
    %c0_0 = arith.constant 0 : index
    %0 = vector.load %arg3[%c0, %c0_0] : memref<32x4xf32, #tpu.memory_space<vmem>>, vector<32x4xf32>
    %c0_1 = arith.constant 0 : index
    %c0_2 = arith.constant 0 : index
    %c0_3 = arith.constant 0 : index
    %1 = vector.load %arg2[%c0_1, %c0_2, %c0_3] : memref<1x4x128xf32, #tpu.memory_space<vmem>>, vector<1x4x128xf32>
    %2 = vector.shape_cast %1 : vector<1x4x128xf32> to vector<4x128xf32>
    %cst = arith.constant dense<0.000000e+00> : vector<32x128xf32>
    %3 = tpu.matmul %0, %2, %cst {dimension_numbers = #tpu.dot_dimension_numbers<[1], [0], [0], [1], [0, 0, 1, 1], [], []>} : vector<32x4xf32>, vector<4x128xf32>, vector<32x128xf32> -> vector<32x128xf32>
    %c0_4 = arith.constant 0 : index
    %c0_5 = arith.constant 0 : index
    %4 = vector.load %arg4[%c0_4, %c0_5] : memref<32x2xf32, #tpu.memory_space<vmem>>, vector<32x1xf32>
    %5 = vector.broadcast %4 : vector<32x1xf32> to vector<32x128xf32>
    %6 = arith.addf %3, %5 : vector<32x128xf32>
    %cst_6 = arith.constant 0.000000e+00 : f32
    %7 = vector.broadcast %cst_6 : f32 to vector<32x128xf32>
    %8 = arith.cmpf oge, %6, %7 : vector<32x128xf32>
    %c0_7 = arith.constant 0 : index
    %c1 = arith.constant 1 : index
    %9 = vector.load %arg4[%c0_7, %c1] : memref<32x2xf32, #tpu.memory_space<vmem>>, vector<32x1xf32>
    %10 = vector.broadcast %9 : vector<32x1xf32> to vector<32x128xf32>
    %11 = arith.mulf %10, %6 : vector<32x128xf32>
    %12 = arith.select %8, %6, %11 : vector<32x128xi1>, vector<32x128xf32>
    %13 = arith.truncf %12 : vector<32x128xf32> to vector<32x128xbf16>
    %c0_8 = arith.constant 0 : index
    %c0_9 = arith.constant 0 : index
    %c0_10 = arith.constant 0 : index
    %14 = vector.load %arg5[%c0_8, %c0_9, %c0_10] : memref<1x32x128xbf16, #tpu.memory_space<vmem>>, vector<1x32x128xbf16>
    %15 = vector.shape_cast %14 : vector<1x32x128xbf16> to vector<32x128xbf16>
    %16 = vector.shape_cast %13 : vector<32x128xbf16> to vector<1x32x128xbf16>
    tpu.vector_store %arg5[%c0_8, %c0_9, %c0_10], %16 {strides = array<i32>} : memref<1x32x128xbf16, #tpu.memory_space<vmem>>, vector<1x32x128xbf16>,
    return
  }
  func.func @transform_0(%arg0: i32, %arg1: i32) -> (i32, i32, i32) {
    %c0_i32 = arith.constant 0 : i32
    %c0_i32_0 = arith.constant 0 : i32
    return %arg0, %c0_i32, %arg1 : i32, i32, i32
  }
  func.func @transform_1(%arg0: i32, %arg1: i32) -> (i32, i32) {
    %c0_i32 = arith.constant 0 : i32
    %c0_i32_0 = arith.constant 0 : i32
    %c0_i32_1 = arith.constant 0 : i32
    return %c0_i32, %c0_i32_0 : i32, i32
  }
  func.func @transform_2(%arg0: i32, %arg1: i32) -> (i32, i32) {
    %c0_i32 = arith.constant 0 : i32
    %c0_i32_0 = arith.constant 0 : i32
    %c0_i32_1 = arith.constant 0 : i32
    return %c0_i32, %c0_i32_0 : i32, i32
  }
  func.func @transform_3(%arg0: i32, %arg1: i32) -> (i32, i32, i32) {
    %c0_i32 = arith.constant 0 : i32
    %c0_i32_0 = arith.constant 0 : i32
    return %arg0, %c0_i32, %arg1 : i32, i32, i32
  }
}

</mosaic_0001>

<bundles_post_ra>
// kernel: tpu_custom_call.1
= control target key start
LH: loop header
LB: loop body
LE: loop exit
PB: predicated region body
PF: predicated region fallthrough
CT: control target
= control target key end

     0   :  { %8 = vsyncpa [#allocation3], 0  ;;  %s895_s0 = inlined_call_operand.vmem [shape: f32[2,4,256], index: 0, kind: input, shape index: {}]   ;;  %s896_s1 = inlined_call_operand.vmem [shape: f32[32,4], index: 1, kind: input, shape index: {}]   ;;  %s897_s2 = inlined_call_operand.vmem [shape: f32[32,2], index: 2, kind: input, shape index: {}]   ;;  %s898_s3 = inlined_call_operand.hbm [shape: bf16[2,32,256], index: 3, kind: output, shape index: {}]  }
   0x1   :  { %10 = vsyncpa [#allocation3 + $0x1], 0  ;;  %s723_s12 = smov 0   ;;  %s725_s13 = smov 0  }
   0x2   :  { %s727_s14 = smov 0   ;;  %s729_s15 = smov 0  }
   0x3   :  { %s731_s16 = smov 0   ;;  %s733_s17 = smov 0  }
   0x4   :  { %s735_s18 = smov 0   ;;  %s737_s19 = smov 0  }
   0x5 LB: > { %s469_s20 = sadd.s32 4294967295, %s695_s19   ;;  %s470_s21 = sadd.s32 4294967294, %s695_s19   ;;  %s695_s19 = sphi %s737_s19, %s16_s19   ;;  %s691_s18 = sphi %s735_s18, %s907_s18   ;;  %s687_s17 = sphi %s733_s17, %s906_s17   ;;  %s683_s16 = sphi %s731_s16, %s905_s16   ;;  %s679_s15 = sphi %s729_s15, %s904_s15   ;;  %s675_s14 = sphi %s727_s14, %s903_s14   ;;  %s671_s13 = sphi %s725_s13, %s902_s13   ;;  %s667_s12 = sphi %s723_s12, %s901_s12  }
   0x6   : > { %s25_s22 = sadd.s32 1, %s687_s17  ;;  %s28_s23 = sadd.s32 1, %s691_s18 }
   0x7   : > { %p26_p0 = scmp.ge.s32.totalorder %s25_s22, 2  ;;  %p117_p1 = scmp.ne.s32.totalorder %s675_s14, %s671_s13 }
   0x8   : > { %p118_p2 = scmp.eq.s32.totalorder %s469_s20, 3  ;;  %p123_p5 = scmp.ne.s32.totalorder %s671_s13, %s667_s12 }
   0x9   : > { %s909_s22 = smov (%p26_p0, %s25_s22), 0  ;;  %s911_s23 = smov (!%p26_p0, %s28_s23), %s691_s18 }
   0xa   : > { %s103_s24 = ssub.s32 %s687_s17, %s909_s22  ;;  %p774_p3 = por %p118_p2, %p117_p1 }
   0xb   : > { %p30_p4 = scmp.ge.s32.totalorder %s911_s23, 2  ;;  %p124_p6 = scmp.eq.s32.totalorder %s470_s21, 3 }
   0xc   : > { %p473_p7 = scmp.ge.s32.totalorder %s695_s19, 1  ;;  %p159_p9 = scmp.lt.s32.totalorder %s695_s19, 5 }
   0xd   : > { %s913_s23 = smov (%p30_p4, %s911_s23), 0  ;;  %p783_p8 = por %p124_p6, %p123_p5 }
   0xe   : > { %s102_s27 = ssub.s32 %s691_s18, %s913_s23  ;;  %s107_s28 = sadd.s32 1, %s675_s14 }
   0xf   : > { %s104_s29 = sor.u32 %s103_s24, %s102_s27  ;;  %p160_p10 = pnand %p473_p7, %p159_p9 }
  0x10   : > { %p105_p11 = scmp.eq.s32.totalorder %s104_s29, 0  ;;  %p186_p12 = scmp.lt.s32.totalorder (!%p160_p10), %s683_s16, 1  ;;  %v194_v0 = vld [vmem:[%s896_s1] sm:$0xff] (!%p160_p10)  ;;  %vm223_vm0 = vcmask (!%p160_p10), 31744   ;;  %v196_v1 = vld [vmem:[%s896_s1 + $0x10] sm:$0xff] (!%p160_p10)  ;;  %v697_v3 = vmov (!%p160_p10), 0  }
  0x11   : > { %163 = sbr.rel (%p160_p10) target bundleno = 269 (0x10d), region = 32  ;;  %p188_p13 = scmp.lt.s32.totalorder (!%p160_p10), %s679_s15, 1  ;;  %513 = vmatprep.mubr.msk.f32.mxu0 (!%p160_p10), %vm223_vm0, %v194_v0  ;;  %516 = vmatprep.mubr.msk.f32.mxu1 (!%p160_p10), %vm223_vm0, %v196_v1  ;;  %v201_v2 = vld [vmem:[%s897_s2 + $0x10] sm:$0xff] (!%p160_p10)  ;;  %v199_v4 = vld [vmem:[%s897_s2] sm:$0xff] (!%p160_p10)  ;;  %v202_v5 = vld [vmem:[%s897_s2 + $0x18] sm:$0xff] (!%p160_p10)  ;;  %vm236_vm1 = vcmask (!%p160_p10), 1043456  }
  0x12   : > { %s792_s30 = scalar_select %p105_p11, %s675_s14, %s107_s28  }
  0x13   : > { %598 = vset.pattern.permute.xlu1 (!%p160_p10), %v697_v3  ;;  %597 = vset.pattern.permute.xlu0 (!%p160_p10), %v697_v3  ;;  %v200_v6 = vld [vmem:[%s897_s2 + $0x8] sm:$0xff] (!%p160_p10)  ;;  %v197_v9 = vld [vmem:[%s896_s1 + $0x18] sm:$0xff] (!%p160_p10)  ;;  %v698_v10 = vmov (!%p160_p10), 1   ;;  %s487_s28 = sshll.u32 (!%p160_p10), %s683_s16, 3  ;;  %s699_s11 = smov (!%p160_p10), [#allocation2]  }
  0x14   : > { %215 = vperm.xlu1 (!%p160_p10), %598, %v201_v2   ;;  %205 = vperm.xlu0 (!%p160_p10), %597, %v199_v4   ;;  %v195_v8 = vld [vmem:[%s896_s1 + $0x8] sm:$0xff] (!%p160_p10)  ;;  %s385_s29 = sadd.s32 (!%p160_p10), %s679_s15, %s487_s28 }
  0x18   : > { %s187_s10 = scalar_select %p186_p12, %s683_s16, 1  ;;  %220 = vperm.xlu1 %598, %v202_v5   ;;  %210 = vperm.xlu0 %597, %v200_v6  }
  0x19   : > { %s189_s21 = scalar_select %p188_p13, %s679_s15, 1 }
  0x1a   : > { %s475_s24 = sshll.u32 %s187_s10, 1  ;;  %s605_s10 = sshll.u32 %s699_s11, 4  ;;  %s606_s10 = int_to_ptr.vmem [resolvable:$false] %s605_s10 }
  0x1b   : > { %s191_s5 = sadd.s32 %s475_s24, %s189_s21  ;;  %s183_s21 = sand.u32 1, %s671_s13  }
  0x1c   : > { %s476_s6 = sshll.u32 %s191_s5, 2  ;;  %600 = vset.pattern.permute.xlu1 %v698_v10  ;;  %599 = vset.pattern.permute.xlu0 %v698_v10  ;;  %s474_s24 = sshll.u32 %s183_s21, 4 }
  0x1d   : > { %s193_s9 = scalar_lea.vmem %s895_s0, %s476_s6  ;;  %334 = vperm.xlu1 %600, %v200_v6   ;;  %330 = vperm.xlu0 %599, %v199_v4   ;;  %s185_s4 = scalar_lea.vmem [#allocation2], %s474_s24 }
  0x1e   : > { %v198_v7 = vld [vmem:[%s193_s9] sm:$0xf]  ;;  %s388_s5 = sshll.u32 %s185_s4, 4  ;;  %s488_s6 = sshll.u32 %s385_s29, 6  ;;  %s834_s5 = int_to_ptr.vmem [resolvable:$true] %s388_s5 }
  0x1f   : > { %511 = vmatprep.subr.msk.mxu0 %vm236_vm1, %v198_v7  ;;  %519 = vmatprep.subr.msk.mxu1 %vm236_vm1, %v198_v7  ;;  %s839_s7 = scalar_lea.hbm %s898_s3, %s488_s6  ;;  %s843_s8 = scalar_lea.sflag [#allocation3], %s183_s21 }
  0x20   : > { %512 = vmatpush3.msk.msra.mxu0 %vm236_vm1, %v198_v7  ;;  %520 = vmatpush3.msk.msra.mxu1 %vm236_vm1, %v198_v7  ;;  %s601_s9 = scalar_lea.vmem %s834_s5, 256  ;;  %s607_s20 = scalar_lea.vmem %s606_s10, 512 }
  0x21   : > { %514 = vmatmul.mubr.msk.f32.vlgmr.msra.gmra.mrb[0].mxu0 %vm223_vm0, %v195_v8  ;;  %517 = vmatmul.mubr.msk.f32.vlgmr.msra.gmra.mrb[0].mxu1 %vm223_vm0, %v197_v9  ;;  %p602_p0 = scmp.ne.s32.totalorder %s834_s5, %s601_s9  ;;  %p608_p4 = scmp.lt.s32.totalorder %s834_s5, %s606_s10 }
  0x22   : > { %338 = vperm.xlu1 %600, %v201_v2   ;;  %342 = vperm.xlu0 %599, %v202_v5   ;;  %p609_p5 = scmp.lt.s32.totalorder %s607_s20, %s601_s9 }
  0x23   : > { %p603_p1 = pnand %p602_p0, %p774_p3 }
  0x24   : > { %p610_p6 = por %p609_p5, %p608_p4 }
  0x25   : > { %p604_p2 = pneg %p603_p1 }
  0x27   : > { %p611_p7 = pnand %p610_p6, %p604_p2 }
  0x93   : > { %v206_v11 = vpop.permute.xlu0 %205  ;;  %v216_v12 = vpop.permute.xlu1 %215 }
  0x97   : > { %v211_v13 = vpop.permute.xlu0 %210  ;;  %v221_v14 = vpop.permute.xlu1 %220 }
  0x9c   : > { %v331_v15 = vpop.permute.xlu0 %330  ;;  %v335_v16 = vpop.permute.xlu1 %334 }
  0xa1   : > { %v343_v23 = vpop.permute.xlu0 %342  ;;  %v339_v26 = vpop.permute.xlu1 %338 }
  0xf4   : > { %v515_v17 = vpop.f32.mrb[0].mxu0  ;;  %v518_v18 = vpop.f32.mrb[0].mxu1 }
  0xf5   : > { %v312_v19 = vadd.f32 %v515_v17, %v211_v13  ;;  %v322_v20 = vadd.f32 %v518_v18, %v221_v14  ;;  %v306_v21 = vpop.f32.mrb[1].mxu0  ;;  %v316_v22 = vpop.f32.mrb[1].mxu1 }
  0xf6   : > { %v307_v24 = vadd.f32 %v306_v21, %v206_v11  ;;  %v317_v25 = vadd.f32 %v316_v22, %v216_v12 }
  0xf7   : > { %vm326_vm2 = vcmp.ge.f32.partialorder %v312_v19, 0.0  ;;  %v346_v27 = vmul.f32 %v335_v16, %v312_v19  ;;  %vm328_vm3 = vcmp.ge.f32.partialorder %v322_v20, 0.0  ;;  %v348_v28 = vmul.f32 %v343_v23, %v322_v20 }
  0xf8   : > { %vm325_vm4 = vcmp.ge.f32.partialorder %v307_v24, 0.0  ;;  %v345_v29 = vmul.f32 %v331_v15, %v307_v24  ;;  %vm327_vm5 = vcmp.ge.f32.partialorder %v317_v25, 0.0  ;;  %v347_v30 = vmul.f32 %v339_v26, %v317_v25 }
  0xf9   : > { %v350_v31 = vsel %vm326_vm2, %v312_v19, %v346_v27  ;;  %v352_v32 = vsel %vm328_vm3, %v322_v20, %v348_v28 }
  0xfa   : > { %v349_v33 = vsel %vm325_vm4, %v307_v24, %v345_v29  ;;  %v351_v34 = vsel %vm327_vm5, %v317_v25, %v347_v30 }
  0xfb   : > { %v498_v35 = vpack.c.bf16 %v350_v31, %v349_v33  ;;  %v503_v36 = vpack.c.bf16 %v352_v32, %v351_v34 }
  0xfd   : > { %499 = vst [vmem:[%s185_s4] sm:$0xff] %v498_v35   ;;  %505 = vst [vmem:[%s185_s4 + $0x8] sm:$0xff] %v503_v36  }
  0xfe   : > { %614 = shalt.err (!%p611_p7)
}
  0xff   : > { %s615_s27 = scalar_lea.hbm %s839_s7, 256  ;;  %s619_s28 = scalar_lea.hbm %s898_s3, 1024 }
 0x100   : > { %p616_p9 = scmp.ne.s32.totalorder %s839_s7, %s615_s27  ;;  %p620_p12 = scmp.lt.u32.totalorder %s839_s7, %s898_s3 }
 0x101   : > { %p621_p13 = scmp.lt.u32.totalorder %s619_s28, %s615_s27  ;;  %p623_p1 = scmp.lt.u32.totalorder %s615_s27, %s839_s7 }
 0x102   : > { %p617_p10 = pnand %p616_p9, %p774_p3 }
 0x103   : > { %p622_p0 = por %p621_p13, %p620_p12 }
 0x104   : > { %p618_p11 = pneg %p617_p10 }
 0x105   : > { %p624_p2 = por %p623_p1, %p622_p0 }
 0x107   : > { %p625_p4 = pnand %p624_p2, %p618_p11 }
 0x109   : > { %628 = shalt.err (!%p625_p4)
}
 0x10a   : > { %s700_s6 = smov 64   ;;  %s701_s15 = smov 128  }
 0x10b   : > { %s702_s16 = smov 4  }
 0x10c   : > { %521 = dma.vmem_to_hbm [thread:$0]  (%p774_p3), %s834_s5, 256, %s839_s7, %s843_s8, %s700_s6, %s701_s15, %s702_s16  }
 0x10d PF: > { %p527_p5 = scmp.ge.s32.totalorder %s695_s19, 2  ;;  %s403_s9 = sand.u32 1, %s667_s12  }
 0x10e   : > { %s404_s11 = scalar_lea.sflag [#allocation3], %s403_s9 }
 0x10f   : > { %p524_p6 = pnand %p527_p5, %p783_p8 }
 0x111   : > { %662 = dma.done.wait (!%p524_p6), %s404_s11, 256  }
 0x112   : > { %664 = vsyncadd (!%p524_p6), %s404_s11, 4294967040  ;;  %s16_s19 = sadd.s32 1, %s695_s19   ;;  %s901_s12 = smov %s671_s13 }
 0x113   : > { %p13_p7 = scmp.ge.s32.totalorder %s16_s19, 6   ;;  %s902_s13 = smov %s675_s14 }
 0x114   : > { %s903_s14 = smov %s792_s30  ;;  %s904_s15 = smov %s687_s17 }
 0x115   : > { %s905_s16 = smov %s691_s18  ;;  %s906_s17 = smov %s909_s22 }
 0x116   : > { %s907_s18 = smov %s913_s23  ;;  %15 = sbr.rel (!%p13_p7) target bundleno = 5 (0x5), region = 67 }
 0x11d   :  { %409 = vsyncpa [#allocation3], 1 }
 0x11e   :  { %411 = vsyncpa [#allocation3 + $0x1], 1 }

</bundles_post_ra>
